<compile_context>
chip_gen: v6e
topology: v6e:2x2x1
jax: 0.10.0
libtpu: 0.0.40
codegen_flags: <defaults>
</compile_context>

<pallas_src>
import functools
import math

import jax
import jax.numpy as jnp
from jax.experimental import pallas as pl
from jax.experimental.pallas import tpu as pltpu

_LANES = 128
_MAX_BLOCK_ROWS = 4096  # (4096, 128) f32 block = 2 MiB per input per buffer


def _cb_bce_kernel(x_ref, t_ref, out_ref, acc_bt, acc_b, acc_t, *,
                   total_valid, batch_size, needs_mask):
    i = pl.program_id(0)
    n = pl.num_programs(0)

    @pl.when(i == 0)
    def _init():
        acc_bt[...] = jnp.zeros_like(acc_bt)
        acc_b[...] = jnp.zeros_like(acc_b)
        acc_t[...] = jnp.zeros_like(acc_t)
        out_ref[0, 0] = 0.0

    block_rows, lanes = x_ref.shape

    x = x_ref[...].astype(jnp.float32)
    t = t_ref[...].astype(jnp.float32)

    if needs_mask:
        # The final grid block (and/or wrapper zero-padding) may cover
        # elements past the valid region; mask by global element index.
        row_ids = jax.lax.broadcasted_iota(jnp.int32, (block_rows, lanes), 0)
        lane_ids = jax.lax.broadcasted_iota(jnp.int32, (block_rows, lanes), 1)
        gidx = i * (block_rows * lanes) + row_ids * lanes + lane_ids
        valid = gidx < total_valid
        t = jnp.where(valid, t, 0.0)

    # Numerically-stable BCE with logits: max(x,0) - x*t + log1p(exp(-|x|)).
    bce = jnp.maximum(x, 0.0) - x * t + jnp.log1p(jnp.exp(-jnp.abs(x)))
    if needs_mask:
        # Kills log(2) at padded slots and any NaN/Inf from over-read garbage
        # (select does not propagate NaN from the discarded branch).
        bce = jnp.where(valid, bce, 0.0)
    bce_t = bce * t

    # Vector accumulation: fold the block into vreg-aligned (8, 128) partial
    # sums (pure vector adds); the cross-lane reduce is deferred to the end.
    nsub = block_rows // 8
    acc_bt[...] += jnp.sum(bce_t.reshape(nsub, 8, lanes), axis=0)
    acc_b[...] += jnp.sum(bce.reshape(nsub, 8, lanes), axis=0)
    acc_t[...] += jnp.sum(t.reshape(nsub, 8, lanes), axis=0)

    @pl.when(i == n - 1)
    def _finalize():
        s_bt = jnp.sum(acc_bt[...])
        s_b = jnp.sum(acc_b[...])
        pos = jnp.sum(acc_t[...])
        total = jnp.float32(total_valid)
        beta = (total - pos) / total
        loss = beta * s_bt + (1.0 - beta) * (s_b - s_bt)
        out_ref[0, 0] = loss / jnp.float32(batch_size)


def class_balanced_bce_loss(logits, target):
    """Scalar class-balanced BCE-with-logits loss (matches the torch module)."""
    batch_size = logits.shape[0]
    total = math.prod(logits.shape)

    # Flatten to a lane-dense (rows, 128) slab in native dtype.  Only pad
    # (one copy) when the element count isn't already a multiple of 128.
    flat_x = logits.reshape(-1)
    flat_t = target.reshape(-1)
    rem = total % _LANES
    if rem:
        pad = _LANES - rem
        flat_x = jnp.pad(flat_x, (0, pad))
        flat_t = jnp.pad(flat_t, (0, pad))
    rows = flat_x.shape[0] // _LANES
    x2 = flat_x.reshape(rows, _LANES)
    t2 = flat_t.reshape(rows, _LANES)

    block_rows = min(_MAX_BLOCK_ROWS, ((rows + 7) // 8) * 8)
    grid = (pl.cdiv(rows, block_rows),)
    # Mask is only compiled in when the grid coverage exceeds the valid count.
    needs_mask = (grid[0] * block_rows * _LANES) != total

    kernel = functools.partial(
        _cb_bce_kernel,
        total_valid=total,
        batch_size=batch_size,
        needs_mask=needs_mask,
    )

    out = pl.pallas_call(
        kernel,
        out_shape=jax.ShapeDtypeStruct((1, 1), jnp.float32),
        grid=grid,
        in_specs=[
            pl.BlockSpec((block_rows, _LANES), lambda i: (i, 0)),
            pl.BlockSpec((block_rows, _LANES), lambda i: (i, 0)),
        ],
        out_specs=pl.BlockSpec((1, 1), lambda i: (0, 0),
                               memory_space=pltpu.MemorySpace.SMEM),
        scratch_shapes=[
            pltpu.VMEM((8, _LANES), jnp.float32),
            pltpu.VMEM((8, _LANES), jnp.float32),
            pltpu.VMEM((8, _LANES), jnp.float32),
        ],
        compiler_params=pltpu.CompilerParams(
            dimension_semantics=("arbitrary",)),
        # TODO(synk): on v7x a leading "parallel" axis of size 2 (per-core
        # partial triples combined in the wrapper) could use both TensorCores.
    )(x2, t2)
    return out[0, 0]


def _reference(logits, target):
    x = logits.astype(jnp.float32)
    t = target.astype(jnp.float32)
    pos = jnp.sum(t)
    neg = jnp.sum(1.0 - t)
    beta = neg / (pos + neg)
    bce = jnp.maximum(x, 0.0) - x * t + jnp.log1p(jnp.exp(-jnp.abs(x)))
    cb = bce * (beta * t) + bce * ((1.0 - beta) * (1.0 - t))
    return jnp.sum(cb) / logits.shape[0]


if __name__ == "__main__":
    key = jax.random.PRNGKey(0)
    k1, k2 = jax.random.split(key)

    # NCHW, small shapes consistent with a segmentation-style loss.
    logits = jax.random.normal(k1, (2, 4, 16, 16), dtype=jnp.float32)
    target = (jax.random.uniform(k2, (2, 4, 16, 16)) > 0.7).astype(jnp.float32)

    loss = class_balanced_bce_loss(logits, target)
    loss = jax.block_until_ready(loss)

    ref = jax.block_until_ready(_reference(logits, target))
    assert jnp.allclose(loss, ref, rtol=1e-5, atol=1e-5), (loss, ref)

    print("KERNEL_OK")
</pallas_src>

<mosaic_0001>
module attributes {stable_mosaic.version = 11 : i64} {
  func.func @_cb_bce_kernel(%arg0: i32, %arg1: memref<16x128xf32, #tpu.memory_space<vmem>>, %arg2: memref<16x128xf32, #tpu.memory_space<vmem>>, %arg3: memref<1x1xf32, #tpu.memory_space<smem>>, %arg4: memref<8x128xf32, #tpu.memory_space<vmem>>, %arg5: memref<8x128xf32, #tpu.memory_space<vmem>>, %arg6: memref<8x128xf32, #tpu.memory_space<vmem>>) attributes {dimension_semantics = [#tpu.dimension_semantics<arbitrary>], iteration_bounds = array<i64: 1>, scalar_prefetch = 0 : i64, scratch_operands = 3 : i64, tpu.core_type = #tpu.core_type<tc>, window_params = [{transform_indices = @transform_0, window_bounds = array<i64: 16, 128>}, {transform_indices = @transform_1, window_bounds = array<i64: 16, 128>}, {transform_indices = @transform_2, window_bounds = array<i64: 1, 1>}]} {
    %c0_i32 = arith.constant 0 : i32
    %0 = arith.cmpi eq, %arg0, %c0_i32 : i32
    %1 = arith.extui %0 : i1 to i32
    %c0_i32_0 = arith.constant 0 : i32
    %2 = arith.cmpi ne, %1, %c0_i32_0 : i32
    scf.if %2 {
      %cst_22 = arith.constant 0.000000e+00 : f32
      %34 = vector.broadcast %cst_22 : f32 to vector<8x128xf32>
      %c0_23 = arith.constant 0 : index
      %c0_24 = arith.constant 0 : index
      %35 = vector.load %arg4[%c0_23, %c0_24] : memref<8x128xf32, #tpu.memory_space<vmem>>, vector<8x128xf32>
      tpu.vector_store %arg4[%c0_23, %c0_24], %34 {strides = array<i32>} : memref<8x128xf32, #tpu.memory_space<vmem>>, vector<8x128xf32>,
      %cst_25 = arith.constant 0.000000e+00 : f32
      %36 = vector.broadcast %cst_25 : f32 to vector<8x128xf32>
      %c0_26 = arith.constant 0 : index
      %c0_27 = arith.constant 0 : index
      %37 = vector.load %arg5[%c0_26, %c0_27] : memref<8x128xf32, #tpu.memory_space<vmem>>, vector<8x128xf32>
      tpu.vector_store %arg5[%c0_26, %c0_27], %36 {strides = array<i32>} : memref<8x128xf32, #tpu.memory_space<vmem>>, vector<8x128xf32>,
      %cst_28 = arith.constant 0.000000e+00 : f32
      %38 = vector.broadcast %cst_28 : f32 to vector<8x128xf32>
      %c0_29 = arith.constant 0 : index
      %c0_30 = arith.constant 0 : index
      %39 = vector.load %arg6[%c0_29, %c0_30] : memref<8x128xf32, #tpu.memory_space<vmem>>, vector<8x128xf32>
      tpu.vector_store %arg6[%c0_29, %c0_30], %38 {strides = array<i32>} : memref<8x128xf32, #tpu.memory_space<vmem>>, vector<8x128xf32>,
      %cst_31 = arith.constant 0.000000e+00 : f32
      %c0_32 = arith.constant 0 : index
      %c0_33 = arith.constant 0 : index
      %40 = memref.load %arg3[%c0_32, %c0_33] : memref<1x1xf32, #tpu.memory_space<smem>>
      memref.store %cst_31, %arg3[%c0_32, %c0_33] : memref<1x1xf32, #tpu.memory_space<smem>>
    } else {
    }
    %c0 = arith.constant 0 : index
    %c0_1 = arith.constant 0 : index
    %3 = vector.load %arg1[%c0, %c0_1] : memref<16x128xf32, #tpu.memory_space<vmem>>, vector<16x128xf32>
    %c0_2 = arith.constant 0 : index
    %c0_3 = arith.constant 0 : index
    %4 = vector.load %arg2[%c0_2, %c0_3] : memref<16x128xf32, #tpu.memory_space<vmem>>, vector<16x128xf32>
    %cst = arith.constant 0.000000e+00 : f32
    %5 = vector.broadcast %cst : f32 to vector<16x128xf32>
    %6 = arith.maximumf %3, %5 : vector<16x128xf32>
    %7 = arith.mulf %3, %4 : vector<16x128xf32>
    %8 = arith.subf %6, %7 : vector<16x128xf32>
    %9 = math.absf %3 : vector<16x128xf32>
    %cst_4 = arith.constant 0.000000e+00 : f32
    %10 = vector.broadcast %cst_4 : f32 to vector<16x128xf32>
    %11 = arith.subf %10, %9 : vector<16x128xf32>
    %12 = math.exp %11 : vector<16x128xf32>
    %13 = math.log1p %12 : vector<16x128xf32>
    %14 = arith.addf %8, %13 : vector<16x128xf32>
    %15 = arith.mulf %14, %4 : vector<16x128xf32>
    %c0_5 = arith.constant 0 : index
    %c0_6 = arith.constant 0 : index
    %16 = vector.load %arg4[%c0_5, %c0_6] : memref<8x128xf32, #tpu.memory_space<vmem>>, vector<8x128xf32>
    %17 = vector.shape_cast %15 : vector<16x128xf32> to vector<2x8x128xf32>
    %cst_7 = arith.constant dense<0.000000e+00> : vector<8x128xf32>
    %18 = vector.multi_reduction <add>, %17, %cst_7 [0] : vector<2x8x128xf32> to vector<8x128xf32>
    %19 = arith.addf %16, %18 : vector<8x128xf32>
    %c0_8 = arith.constant 0 : index
    %c0_9 = arith.constant 0 : index
    %20 = vector.load %arg4[%c0_8, %c0_9] : memref<8x128xf32, #tpu.memory_space<vmem>>, vector<8x128xf32>
    tpu.vector_store %arg4[%c0_8, %c0_9], %19 {strides = array<i32>} : memref<8x128xf32, #tpu.memory_space<vmem>>, vector<8x128xf32>,
    %c0_10 = arith.constant 0 : index
    %c0_11 = arith.constant 0 : index
    %21 = vector.load %arg5[%c0_10, %c0_11] : memref<8x128xf32, #tpu.memory_space<vmem>>, vector<8x128xf32>
    %22 = vector.shape_cast %14 : vector<16x128xf32> to vector<2x8x128xf32>
    %cst_12 = arith.constant dense<0.000000e+00> : vector<8x128xf32>
    %23 = vector.multi_reduction <add>, %22, %cst_12 [0] : vector<2x8x128xf32> to vector<8x128xf32>
    %24 = arith.addf %21, %23 : vector<8x128xf32>
    %c0_13 = arith.constant 0 : index
    %c0_14 = arith.constant 0 : index
    %25 = vector.load %arg5[%c0_13, %c0_14] : memref<8x128xf32, #tpu.memory_space<vmem>>, vector<8x128xf32>
    tpu.vector_store %arg5[%c0_13, %c0_14], %24 {strides = array<i32>} : memref<8x128xf32, #tpu.memory_space<vmem>>, vector<8x128xf32>,
    %c0_15 = arith.constant 0 : index
    %c0_16 = arith.constant 0 : index
    %26 = vector.load %arg6[%c0_15, %c0_16] : memref<8x128xf32, #tpu.memory_space<vmem>>, vector<8x128xf32>
    %27 = vector.shape_cast %4 : vector<16x128xf32> to vector<2x8x128xf32>
    %cst_17 = arith.constant dense<0.000000e+00> : vector<8x128xf32>
    %28 = vector.multi_reduction <add>, %27, %cst_17 [0] : vector<2x8x128xf32> to vector<8x128xf32>
    %29 = arith.addf %26, %28 : vector<8x128xf32>
    %c0_18 = arith.constant 0 : index
    %c0_19 = arith.constant 0 : index
    %30 = vector.load %arg6[%c0_18, %c0_19] : memref<8x128xf32, #tpu.memory_space<vmem>>, vector<8x128xf32>
    tpu.vector_store %arg6[%c0_18, %c0_19], %29 {strides = array<i32>} : memref<8x128xf32, #tpu.memory_space<vmem>>, vector<8x128xf32>,
    %c0_i32_20 = arith.constant 0 : i32
    %31 = arith.cmpi eq, %arg0, %c0_i32_20 : i32
    %32 = arith.extui %31 : i1 to i32
    %c0_i32_21 = arith.constant 0 : i32
    %33 = arith.cmpi ne, %32, %c0_i32_21 : i32
    scf.if %33 {
      %c0_22 = arith.constant 0 : index
      %c0_23 = arith.constant 0 : index
      %34 = vector.load %arg4[%c0_22, %c0_23] : memref<8x128xf32, #tpu.memory_space<vmem>>, vector<8x128xf32>
      %35 = vector.shape_cast %34 : vector<8x128xf32> to vector<1x8x128xf32>
      %cst_24 = arith.constant dense<0.000000e+00> : vector<1xf32>
      %36 = vector.multi_reduction <add>, %35, %cst_24 [1, 2] : vector<1x8x128xf32> to vector<1xf32>
      %37 = vector.shape_cast %36 : vector<1xf32> to vector<1x1x1xf32>
      %38 = vector.extract %37[0, 0, 0] : f32 from vector<1x1x1xf32>
      %c0_25 = arith.constant 0 : index
      %c0_26 = arith.constant 0 : index
      %39 = vector.load %arg5[%c0_25, %c0_26] : memref<8x128xf32, #tpu.memory_space<vmem>>, vector<8x128xf32>
      %40 = vector.shape_cast %39 : vector<8x128xf32> to vector<1x8x128xf32>
      %cst_27 = arith.constant dense<0.000000e+00> : vector<1xf32>
      %41 = vector.multi_reduction <add>, %40, %cst_27 [1, 2] : vector<1x8x128xf32> to vector<1xf32>
      %42 = vector.shape_cast %41 : vector<1xf32> to vector<1x1x1xf32>
      %43 = vector.extract %42[0, 0, 0] : f32 from vector<1x1x1xf32>
      %c0_28 = arith.constant 0 : index
      %c0_29 = arith.constant 0 : index
      %44 = vector.load %arg6[%c0_28, %c0_29] : memref<8x128xf32, #tpu.memory_space<vmem>>, vector<8x128xf32>
      %45 = vector.shape_cast %44 : vector<8x128xf32> to vector<1x8x128xf32>
      %cst_30 = arith.constant dense<0.000000e+00> : vector<1xf32>
      %46 = vector.multi_reduction <add>, %45, %cst_30 [1, 2] : vector<1x8x128xf32> to vector<1xf32>
      %47 = vector.shape_cast %46 : vector<1xf32> to vector<1x1x1xf32>
      %48 = vector.extract %47[0, 0, 0] : f32 from vector<1x1x1xf32>
      %cst_31 = arith.constant 2.048000e+03 : f32
      %49 = arith.subf %cst_31, %48 : f32
      %cst_32 = arith.constant 2.048000e+03 : f32
      %50 = arith.divf %49, %cst_32 : f32
      %51 = arith.mulf %50, %38 : f32
      %cst_33 = arith.constant 1.000000e+00 : f32
      %52 = arith.subf %cst_33, %50 : f32
      %53 = arith.subf %43, %38 : f32
      %54 = arith.mulf %52, %53 : f32
      %55 = arith.addf %51, %54 : f32
      %cst_34 = arith.constant 2.000000e+00 : f32
      %56 = arith.divf %55, %cst_34 : f32
      %c0_35 = arith.constant 0 : index
      %c0_36 = arith.constant 0 : index
      %57 = memref.load %arg3[%c0_35, %c0_36] : memref<1x1xf32, #tpu.memory_space<smem>>
      memref.store %56, %arg3[%c0_35, %c0_36] : memref<1x1xf32, #tpu.memory_space<smem>>
    } else {
    }
    return
  }
  func.func @transform_0(%arg0: i32) -> (i32, i32) {
    %c0_i32 = arith.constant 0 : i32
    %c0_i32_0 = arith.constant 0 : i32
    return %arg0, %c0_i32 : i32, i32
  }
  func.func @transform_1(%arg0: i32) -> (i32, i32) {
    %c0_i32 = arith.constant 0 : i32
    %c0_i32_0 = arith.constant 0 : i32
    return %arg0, %c0_i32 : i32, i32
  }
  func.func @transform_2(%arg0: i32) -> (i32, i32) {
    %c0_i32 = arith.constant 0 : i32
    %c0_i32_0 = arith.constant 0 : i32
    %c0_i32_1 = arith.constant 0 : i32
    return %c0_i32, %c0_i32_0 : i32, i32
  }
}

</mosaic_0001>

<bundles_post_ra>
// kernel: tpu_custom_call.1
= control target key start
LH: loop header
LB: loop body
LE: loop exit
PB: predicated region body
PF: predicated region fallthrough
CT: control target
= control target key end

     0   :  { %7 = vsyncpa [#allocation6], 0  ;;  %s266_s0 = inlined_call_operand.hbm [shape: f32[16,128], index: 0, kind: input, shape index: {}]   ;;  %s267_s1 = inlined_call_operand.hbm [shape: f32[16,128], index: 1, kind: input, shape index: {}]   ;;  %s268_s2 = inlined_call_operand.hbm [shape: f32[1,1], index: 2, kind: output, shape index: {}]  }
   0x1   :  { %8 = vsyncpa [#allocation9], 0 }
   0x2   :  { %9 = vsyncpa [#allocation7], 0  ;;  %s237_s9 = smov [#allocation5]  }
   0x3   :  { %s15_s10 = sshll.u32 %s237_s9, 4  ;;  %s16_s10 = int_to_ptr.vmem [resolvable:$true] %s15_s10 }
   0x4   :  { %s191_s11 = scalar_lea.vmem %s16_s10, 256  ;;  %p196_p1 = scmp.lt.s32.totalorder %s16_s10, %s16_s10 }
   0x5   :  { %p192_p0 = scmp.ne.s32.totalorder %s16_s10, %s191_s11  ;;  %p197_p2 = scmp.lt.s32.totalorder %s191_s11, %s191_s11 }
   0x7   :  { %p198_p3 = por %p197_p2, %p196_p1 }
   0x9   :  { %p199_p4 = pnand %p198_p3, %p192_p0 }
   0xb   :  { %202 = shalt.err (!%p199_p4)
}
   0xc   :  { %s238_s12 = smov 128   ;;  %s239_s13 = smov 8  }
   0xd   :  { %21 = dma.hbm_to_vmem [thread:$0]  %s266_s0, 256, %s16_s10, [#allocation6], %s238_s12, %s238_s12, %s239_s13  }
   0xe   :  { %s240_s16 = smov [#allocation8]  }
   0xf   :  { %s27_s17 = sshll.u32 %s240_s16, 4  ;;  %s28_s17 = int_to_ptr.vmem [resolvable:$true] %s27_s17 }
  0x10   :  { %s211_s18 = scalar_lea.vmem %s28_s17, 256  ;;  %p216_p6 = scmp.lt.s32.totalorder %s28_s17, %s28_s17 }
  0x11   :  { %p212_p5 = scmp.ne.s32.totalorder %s28_s17, %s211_s18  ;;  %p217_p7 = scmp.lt.s32.totalorder %s211_s18, %s211_s18 }
  0x13   :  { %p218_p8 = por %p217_p7, %p216_p6 }
  0x15   :  { %p219_p9 = pnand %p218_p8, %p212_p5 }
  0x17   :  { %222 = shalt.err (!%p219_p9)
}
  0x18   :  { %33 = dma.hbm_to_vmem [thread:$0]  %s267_s1, 256, %s28_s17, [#allocation9], %s238_s12, %s238_s12, %s239_s13  }
  0x19   :  { %231 = dma.done.wait [#allocation6], 256  }
  0x1a   :  { %232 = vsyncadd [#allocation6], 4294967040 }
  0x1b   :  { %233 = dma.done.wait [#allocation9], 256  }
  0x1c   :  { %234 = vsyncadd [#allocation9], 4294967040  ;;  %v51_v0 = vld [vmem:[#allocation8] sm:$0xff]  ;;  %v52_v1 = vld [vmem:[#allocation8 + $0x8] sm:$0xff]  ;;  %s241_s30 = smov [#allocation10]  }
  0x1d   :  { %v49_v2 = vld [vmem:[#allocation5] sm:$0xff]  ;;  %v98_v3 = vadd.f32 %v52_v1, %v51_v0  ;;  %v50_v4 = vld [vmem:[#allocation5 + $0x8] sm:$0xff] }
  0x1e   :  { %v59_v5 = vand.u32 2147483647, %v49_v2  ;;  %v60_v6 = vand.u32 2147483647, %v50_v4  ;;  %v55_v18 = vmul.f32 %v51_v0, %v49_v2  ;;  %v53_v19 = vmax.f32 %v49_v2, 0.0 }
  0x1f   :  { %125 = vadd.xlane.f32.xlu1 %v98_v3  ;;  %v56_v22 = vmul.f32 %v52_v1, %v50_v4  ;;  %v54_v23 = vmax.f32 %v50_v4, 0.0 }
  0x20   :  { %v61_v7 = vsub.f32 0.0, %v59_v5  ;;  %v62_v8 = vsub.f32 0.0, %v60_v6  ;;  %v57_v27 = vsub.f32 %v53_v19, %v55_v18 }
  0x21   :  { %v58_v30 = vsub.f32 %v54_v23, %v56_v22 }
  0x22   :  { %v63_v9 = vmul.f32 1.442695, %v61_v7  ;;  %v65_v10 = vmul.f32 1.442695, %v62_v8 }
  0x24   :  { %175 = vpow2.f32 %v63_v9 }
  0x25   :  { %177 = vpow2.f32 %v65_v10 }
  0x31   :  { %v176_v11 = vpop.eup %175 }
  0x32   :  { %v178_v12 = vpop.eup %177  ;;  %v67_v13 = vadd.f32 1.0, %v176_v11  ;;  %v70_v15 = vmul.f32 -0.5, %v176_v11  ;;  %v73_v20 = vand.u32 2147483647, %v176_v11 }
  0x33   :  { %v76_v14 = vadd.f32 1.0, %v178_v12  ;;  %v79_v16 = vmul.f32 -0.5, %v178_v12  ;;  %v82_v24 = vand.u32 2147483647, %v178_v12 }
  0x34   :  { %179 = vlog2.f32 %v67_v13  ;;  %v71_v17 = vadd.f32 1.0, %v70_v15  ;;  %vm74_vm0 = vcmp.lt.f32.partialorder %v73_v20, 0.0004427343 }
  0x35   :  { %181 = vlog2.f32 %v76_v14  ;;  %v80_v21 = vadd.f32 1.0, %v79_v16  ;;  %vm83_vm1 = vcmp.lt.f32.partialorder %v82_v24, 0.0004427343 }
  0x36   :  { %v72_v25 = vmul.f32 %v176_v11, %v71_v17 }
  0x37   :  { %v81_v28 = vmul.f32 %v178_v12, %v80_v21 }
  0x41   :  { %v180_v26 = vpop.eup %179 }
  0x42   :  { %v182_v29 = vpop.eup %181  ;;  %v69_v31 = vmul.f32 0.6931472, %v180_v26 }
  0x43   :  { %v78_v32 = vmul.f32 0.6931472, %v182_v29 }
  0x44   :  { %v75_v33 = vsel %vm74_vm0, %v72_v25, %v69_v31 }
  0x45   :  { %v84_v34 = vsel %vm83_vm1, %v81_v28, %v78_v32  ;;  %v85_v35 = vadd.f32 %v75_v33, %v57_v27 }
  0x46   :  { %v86_v36 = vadd.f32 %v84_v34, %v58_v30 }
  0x47   :  { %v87_v37 = vmul.f32 %v85_v35, %v51_v0 }
  0x48   :  { %v88_v38 = vmul.f32 %v86_v36, %v52_v1  ;;  %v94_v40 = vadd.f32 %v86_v36, %v85_v35 }
  0x4a   :  { %v90_v39 = vadd.f32 %v88_v38, %v87_v37 }
  0x4c   :  { %105 = vadd.xlane.f32.xlu0 %v90_v39 }
  0x50   :  { %115 = vadd.xlane.f32.xlu0 %v94_v40 }
  0xa8   :  { %v126_v41 = vpop.xlane.xlu1 %125 }
  0xa9   :  { %v127_v42 = vrot.slane %v126_v41, 4 }
  0xab   :  { %v128_v43 = vadd.f32 %v127_v42, %v126_v41 }
  0xad   :  { %v129_v47 = vrot.slane %v128_v43, 2 }
  0xaf   :  { %v130_v53 = vadd.f32 %v129_v47, %v128_v43 }
  0xb1   :  { %v131_v58 = vrot.slane %v130_v53, 1 }
  0xb3   :  { %v132_v61 = vadd.f32 %v131_v58, %v130_v53 }
  0xd5   :  { %v106_v44 = vpop.xlane.xlu0 %105 }
  0xd6   :  { %v107_v45 = vrot.slane %v106_v44, 4 }
  0xd8   :  { %v108_v46 = vadd.f32 %v107_v45, %v106_v44 }
  0xd9   :  { %v116_v48 = vpop.xlane.xlu0 %115 }
  0xda   :  { %v109_v49 = vrot.slane %v108_v46, 2  ;;  %v117_v50 = vrot.slane %v116_v48, 4 }
  0xdc   :  { %v118_v51 = vadd.f32 %v117_v50, %v116_v48  ;;  %v110_v52 = vadd.f32 %v109_v49, %v108_v46 }
  0xde   :  { %v119_v54 = vrot.slane %v118_v51, 2  ;;  %v111_v55 = vrot.slane %v110_v52, 1 }
  0xe0   :  { %v120_v56 = vadd.f32 %v119_v54, %v118_v51  ;;  %v112_v57 = vadd.f32 %v111_v55, %v110_v52 }
  0xe2   :  { %163 = vpush %v112_v57  ;;  %v121_v59 = vrot.slane %v120_v56, 1 }
  0xe4   :  { %v122_v60 = vadd.f32 %v121_v59, %v120_v56 }
  0xe6   :  { %165 = vpush %v122_v60 }
  0xe7   :  { %167 = vpush %v132_v61 }
 0x113   :  { %s164_s0 = spop %163 }
 0x117   :  { %s166_s1 = spop %165 }
 0x118   :  { %s168_s21 = spop %167  ;;  %s140_s24 = ssub.f32 %s166_s1, %s164_s0 }
 0x119   :  { %s134_s22 = ssub.f32 2048.0, %s168_s21 }
 0x11b   :  { %s137_s23 = smul.f32 0.00048828125, %s134_s22 }
 0x11d   :  { %s139_s25 = ssub.f32 1.0, %s137_s23  ;;  %s138_s26 = smul.f32 %s164_s0, %s137_s23 }
 0x11f   :  { %s141_s27 = smul.f32 %s140_s24, %s139_s25 }
 0x121   :  { %s142_s28 = sadd.f32 %s141_s27, %s138_s26 }
 0x123   :  { %s145_s29 = smul.f32 0.5, %s142_s28 }
 0x125   :  { %147 = sst [smem:[#allocation10]] %s145_s29 }
 0x126   :  { %155 = dma.smem_to_hbm %s241_s30, 16, %s268_s2, [#allocation7]  }
 0x127   :  { %235 = dma.done.wait [#allocation7], 16  }
 0x128   :  { %236 = vsyncadd [#allocation7], 4294967280 }
 0x129   :  { %159 = sfence }
 0x12a   :  { %160 = vsyncpa [#allocation6], 1 }
 0x12b   :  { %161 = vsyncpa [#allocation9], 1 }
 0x12c   :  { %162 = vsyncpa [#allocation7], 1 }

</bundles_post_ra>
